<compile_context>
chip_gen: v5e
topology: v5e:2x2
jax: 0.10.0
libtpu: 0.0.40
codegen_flags: <defaults>
</compile_context>

<pallas_src>
import jax
import jax.numpy as jnp
from jax.experimental import pallas as pl
from jax.experimental.pallas import tpu as pltpu

LANE = 128
SUBLANE = 8
_MIB = 1024 * 1024


# ---------------------------------------------------------------------------
# Helpers
# ---------------------------------------------------------------------------
def _round_up(n, m):
    return ((n + m - 1) // m) * m


def _pad2d(a, rows, cols):
    pr, pc = rows - a.shape[0], cols - a.shape[1]
    if pr == 0 and pc == 0:
        return a
    return jnp.pad(a, ((0, pr), (0, pc)))


def _vmem_capacity_bytes():
    # Per-generation VMEM: v5e/v6e 128 MiB, v7x 64 MiB per TensorCore.
    try:
        return int(pltpu.get_tpu_info().vmem_capacity_bytes)
    except Exception:
        return 64 * _MIB  # conservative fallback (v7x per-core)


def _row_tile(np_, vmem_cap):
    """Row-block size: 512/256 on v5e/v6e, <=256 on v7x; np_ is a LANE multiple."""
    max_tm = 256 if vmem_cap <= 64 * _MIB else 512
    for tm in (512, 256, 128):
        if tm <= max_tm and np_ % tm == 0:
            return tm
    return 128


# ---------------------------------------------------------------------------
# Kernels
# ---------------------------------------------------------------------------
def _gcn_layer_body(adj_blk, h, w, b):
    """One GraphConvolution on a row block:  relu(((A_blk h) W) / deg + b)."""
    # Degree of this block's rows via an MXU mat-vec (exact for 0/1 adjacency,
    # f32 accumulation) — no f32 copy of adj, XLU stays free.
    ones = jnp.ones((h.shape[0], 1), jnp.bfloat16)
    deg = jnp.dot(adj_blk, ones, preferred_element_type=jnp.float32)     # (TM, 1)
    # max(deg, 1) guards isolated / padded all-zero rows (reference -> inf/nan).
    inv_deg = pl.reciprocal(jnp.maximum(deg, 1.0), approx=True)          # EUP

    # Aggregate-first:  (A_blk h) W == A_blk (h W)  — row-tileable, N^2-scaled
    # matmul has a dense 128-multiple K (=Np) and the padded feature width RHS.
    agg = jnp.dot(adj_blk, h, preferred_element_type=jnp.float32)        # (TM, Fi)
    out = jnp.dot(agg.astype(jnp.bfloat16), w,
                  preferred_element_type=jnp.float32)                    # (TM, Fo)
    return jnp.maximum(out * inv_deg + b, 0.0)  # scale + bias + relu_ on f32 acc


def _gcn_layer_kernel(adj_ref, h_ref, w_ref, b_ref, o_ref):
    out = _gcn_layer_body(adj_ref[...], h_ref[...], w_ref[...], b_ref[...])
    o_ref[...] = out.astype(o_ref.dtype)  # carried bf16 between layers


def _gcn_last_layer_kernel(adj_ref, h_ref, w_ref, b_ref,
                           w1_ref, b1_ref, w2_ref, b2_ref, o_ref):
    h = _gcn_layer_body(adj_ref[...], h_ref[...], w_ref[...], b_ref[...])
    # Fused output head: relu(h @ W1 + b1) @ W2 + b2 (per-row -> tiles for free).
    h1 = jnp.maximum(
        jnp.dot(h.astype(jnp.bfloat16), w1_ref[...],
                preferred_element_type=jnp.float32) + b1_ref[...], 0.0)
    o_ref[...] = jnp.dot(h1.astype(jnp.bfloat16), w2_ref[...],
                         preferred_element_type=jnp.float32) + b2_ref[...]


# ---------------------------------------------------------------------------
# Wrapper: pad, tile rows, launch one pallas_call per GCN layer (head fused
# into the last one), slice the padded result.
# ---------------------------------------------------------------------------
def gcn_forward(params, x, adj, dropouts=None):
    del dropouts  # F.dropout's result is discarded in the reference forward.
    n, f_in = x.shape
    n_classes = params["out2"][0].shape[1]

    vmem_cap = _vmem_capacity_bytes()
    vmem_budget = vmem_cap - 2 * _MIB  # headroom for Mosaic internal scratch

    # Node dim padded to a LANE multiple -> lane-dense adj, full-depth MXU K.
    np_ = _round_up(max(n, SUBLANE), LANE)
    tm = _row_tile(np_, vmem_cap)
    grid = (np_ // tm,)

    adj_p = _pad2d(adj, np_, np_).astype(jnp.bfloat16)  # 0/1 -> exact in bf16
    h = _pad2d(x, np_, _round_up(f_in, LANE)).astype(jnp.bfloat16)

    def _pad_w_b(w, b):
        fi_p = _round_up(w.shape[0], LANE)
        fo_p = _round_up(w.shape[1], LANE)
        return (_pad2d(w, fi_p, fo_p).astype(jnp.bfloat16),
                _pad2d(b.reshape(1, -1), 1, fo_p).astype(jnp.float32))

    gcn_wb = [_pad_w_b(w, b) for (w, b) in params["gcn"]]
    w1_p, b1_p = _pad_w_b(*params["out1"])
    w2_p, b2_p = _pad_w_b(*params["out2"])

    def _vmem_need(args, out_cols, out_itemsize, f_in_p, f_out_p):
        need = 2 * tm * np_ * 2                                        # adj row blk, 2 bufs
        need += sum(2 * a.size * a.dtype.itemsize for a in args[1:])   # resident blocks
        need += 2 * tm * out_cols * out_itemsize                       # output row blk
        need += 4 * tm * (f_in_p + 3 * f_out_p)                        # f32 agg/acc/temps
        return need

    def _run_layer(kernel, args, out_cols, out_dtype, f_in_p, f_out_p, flops):
        out_itemsize = jnp.dtype(out_dtype).itemsize
        need = _vmem_need(args, out_cols, out_itemsize, f_in_p, f_out_p)
        # TODO(synk): K-tile the adjacency columns (and stream h) once a single
        # (TM, Np) row block + resident h no longer fit the per-core VMEM.
        assert need <= vmem_budget, (need, vmem_budget)
        vmem_limit = int(min(vmem_budget, max(2 * need, 32 * _MIB)))

        in_specs = [pl.BlockSpec((tm, np_), lambda i: (i, 0))]          # adj rows stream
        in_specs += [pl.BlockSpec(a.shape, lambda i: (0, 0)) for a in args[1:]]
        bytes_accessed = (sum(a.size * a.dtype.itemsize for a in args)
                          + np_ * out_cols * out_itemsize)

        return pl.pallas_call(
            kernel,
            out_shape=jax.ShapeDtypeStruct((np_, out_cols), out_dtype),
            grid=grid,
            in_specs=in_specs,
            out_specs=pl.BlockSpec((tm, out_cols), lambda i: (i, 0)),
            compiler_params=pltpu.CompilerParams(
                dimension_semantics=("parallel",),
                vmem_limit_bytes=vmem_limit),
            cost_estimate=pl.CostEstimate(
                flops=flops, transcendentals=np_, bytes_accessed=bytes_accessed),
        )(*args)

    num_layers = len(gcn_wb)
    out_p = None
    for li, (w_p, b_p) in enumerate(gcn_wb):
        f_in_p, f_out_p = w_p.shape
        flops = 2 * np_ * np_ * f_in_p + 2 * np_ * f_in_p * f_out_p + 2 * np_ * np_
        if li < num_layers - 1:
            h = _run_layer(_gcn_layer_kernel, [adj_p, h, w_p, b_p],
                           f_out_p, jnp.bfloat16, f_in_p, f_out_p, flops)
        else:
            flops += 2 * np_ * w1_p.shape[0] * w1_p.shape[1]
            flops += 2 * np_ * w2_p.shape[0] * w2_p.shape[1]
            out_p = _run_layer(_gcn_last_layer_kernel,
                               [adj_p, h, w_p, b_p, w1_p, b1_p, w2_p, b2_p],
                               w2_p.shape[1], jnp.float32, f_in_p, f_out_p, flops)

    return out_p[:n, :n_classes]


# ---------------------------------------------------------------------------
# Pure-JAX reference (mirrors the PyTorch module exactly, f32)
# ---------------------------------------------------------------------------
def gcn_reference(params, x, adj):
    deg = jnp.sum(adj, axis=-1, keepdims=True)
    h = x
    for w, b in params["gcn"]:
        h = jnp.maximum((adj @ (h @ w)) / deg + b, 0.0)
    w1, b1 = params["out1"]
    h = jnp.maximum(h @ w1 + b1, 0.0)
    w2, b2 = params["out2"]
    return h @ w2 + b2


# ---------------------------------------------------------------------------
# Parameter construction (deterministic, shapes match the PyTorch module)
# ---------------------------------------------------------------------------
def init_gcn_params(key, f_in, n_classes, hidden):
    params = {"gcn": [], "out1": None, "out2": None}
    fan_ins = [f_in] + hidden[:-1]
    for fi, fo in zip(fan_ins, hidden):
        key, kw = jax.random.split(key)
        bound = jnp.sqrt(6.0 / fi)                     # kaiming_uniform_ (relu)
        w = jax.random.uniform(kw, (fi, fo), jnp.float32, -bound, bound)
        b = jnp.zeros((fo,), jnp.float32)
        params["gcn"].append((w, b))

    f_out = hidden[-1]

    def linear_init(k, fi, fo):
        kw, kb = jax.random.split(k)
        bound = 1.0 / jnp.sqrt(fi)
        w = jax.random.uniform(kw, (fi, fo), jnp.float32, -bound, bound)
        b = jax.random.uniform(kb, (fo,), jnp.float32, -bound, bound)
        return w, b

    key, k1, k2 = jax.random.split(key, 3)
    params["out1"] = linear_init(k1, f_out, f_out)
    params["out2"] = linear_init(k2, f_out, n_classes)
    return params


# ---------------------------------------------------------------------------
# Demo
# ---------------------------------------------------------------------------
if __name__ == "__main__":
    key = jax.random.PRNGKey(0)

    N, F_IN = 16, 8
    HIDDEN = [32, 16]
    N_CLASSES = 4
    DROPOUTS = [0.1, 0.1]   # no-op: reference forward discards F.dropout's result

    key, kx, ka, kp = jax.random.split(key, 4)
    x = jax.random.normal(kx, (N, F_IN), jnp.float32)
    # Random symmetric binary adjacency with self-loops (degrees >= 1).
    adj_raw = (jax.random.uniform(ka, (N, N)) > 0.6).astype(jnp.float32)
    adj = jnp.clip(adj_raw + adj_raw.T + jnp.eye(N, dtype=jnp.float32), 0.0, 1.0)

    params = init_gcn_params(kp, F_IN, N_CLASSES, HIDDEN)

    out = gcn_forward(params, x, adj, DROPOUTS)
    out = jax.block_until_ready(out)
    assert out.shape == (N, N_CLASSES), out.shape

    # Sanity check against the f32 pure-JAX reference (loose tol: bf16 MXU).
    ref = gcn_reference(params, x, adj)
    assert bool(jnp.all(jnp.isfinite(out)))
    assert bool(jnp.allclose(out, ref, rtol=0.15, atol=0.15)), float(
        jnp.max(jnp.abs(out - ref)))

    print("KERNEL_OK")
</pallas_src>

<mosaic_0001>
module attributes {stable_mosaic.version = 11 : i64} {
  func.func @_gcn_layer_kernel(%arg0: i32, %arg1: memref<128x128xbf16, #tpu.memory_space<vmem>>, %arg2: memref<128x128xbf16, #tpu.memory_space<vmem>>, %arg3: memref<128x128xbf16, #tpu.memory_space<vmem>>, %arg4: memref<1x128xf32, #tpu.memory_space<vmem>>, %arg5: memref<128x128xbf16, #tpu.memory_space<vmem>>) attributes {dimension_semantics = [#tpu.dimension_semantics<parallel>], iteration_bounds = array<i64: 1>, scalar_prefetch = 0 : i64, scratch_operands = 0 : i64, tpu.core_type = #tpu.core_type<tc>, window_params = [{transform_indices = @transform_0, window_bounds = array<i64: 128, 128>}, {pipeline_mode = #tpu.pipeline_mode<synchronous>, transform_indices = @transform_1, window_bounds = array<i64: 128, 128>}, {pipeline_mode = #tpu.pipeline_mode<synchronous>, transform_indices = @transform_2, window_bounds = array<i64: 128, 128>}, {pipeline_mode = #tpu.pipeline_mode<synchronous>, transform_indices = @transform_3, window_bounds = array<i64: 1, 128>}, {transform_indices = @transform_4, window_bounds = array<i64: 128, 128>}]} {
    %c0 = arith.constant 0 : index
    %c0_0 = arith.constant 0 : index
    %0 = vector.load %arg1[%c0, %c0_0] : memref<128x128xbf16, #tpu.memory_space<vmem>>, vector<128x128xbf16>
    %c0_1 = arith.constant 0 : index
    %c0_2 = arith.constant 0 : index
    %1 = vector.load %arg2[%c0_1, %c0_2] : memref<128x128xbf16, #tpu.memory_space<vmem>>, vector<128x128xbf16>
    %c0_3 = arith.constant 0 : index
    %c0_4 = arith.constant 0 : index
    %2 = vector.load %arg3[%c0_3, %c0_4] : memref<128x128xbf16, #tpu.memory_space<vmem>>, vector<128x128xbf16>
    %c0_5 = arith.constant 0 : index
    %c0_6 = arith.constant 0 : index
    %3 = vector.load %arg4[%c0_5, %c0_6] : memref<1x128xf32, #tpu.memory_space<vmem>>, vector<1x128xf32>
    %cst = arith.constant 1.000000e+00 : bf16
    %4 = vector.broadcast %cst : bf16 to vector<128x1xbf16>
    %cst_7 = arith.constant dense<0.000000e+00> : vector<128x1xf32>
    %5 = tpu.matmul %0, %4, %cst_7 {dimension_numbers = #tpu.dot_dimension_numbers<[1], [0], [0], [1], [0, 0, 1, 1], [], []>} : vector<128x128xbf16>, vector<128x1xbf16>, vector<128x1xf32> -> vector<128x1xf32>
    %cst_8 = arith.constant 1.000000e+00 : f32
    %6 = vector.broadcast %cst_8 : f32 to vector<128x1xf32>
    %7 = arith.maximumf %5, %6 : vector<128x1xf32>
    %8 = tpu.reciprocal %7 {approx = true} : vector<128x1xf32> -> vector<128x1xf32>
    %cst_9 = arith.constant dense<0.000000e+00> : vector<128x128xf32>
    %9 = tpu.matmul %0, %1, %cst_9 {dimension_numbers = #tpu.dot_dimension_numbers<[1], [0], [0], [1], [0, 0, 1, 1], [], []>} : vector<128x128xbf16>, vector<128x128xbf16>, vector<128x128xf32> -> vector<128x128xf32>
    %10 = arith.truncf %9 : vector<128x128xf32> to vector<128x128xbf16>
    %cst_10 = arith.constant dense<0.000000e+00> : vector<128x128xf32>
    %11 = tpu.matmul %10, %2, %cst_10 {dimension_numbers = #tpu.dot_dimension_numbers<[1], [0], [0], [1], [0, 0, 1, 1], [], []>} : vector<128x128xbf16>, vector<128x128xbf16>, vector<128x128xf32> -> vector<128x128xf32>
    %12 = vector.broadcast %8 : vector<128x1xf32> to vector<128x128xf32>
    %13 = arith.mulf %11, %12 : vector<128x128xf32>
    %14 = vector.broadcast %3 : vector<1x128xf32> to vector<128x128xf32>
    %15 = arith.addf %13, %14 : vector<128x128xf32>
    %cst_11 = arith.constant 0.000000e+00 : f32
    %16 = vector.broadcast %cst_11 : f32 to vector<128x128xf32>
    %17 = arith.maximumf %15, %16 : vector<128x128xf32>
    %18 = arith.truncf %17 : vector<128x128xf32> to vector<128x128xbf16>
    %c0_12 = arith.constant 0 : index
    %c0_13 = arith.constant 0 : index
    %19 = vector.load %arg5[%c0_12, %c0_13] : memref<128x128xbf16, #tpu.memory_space<vmem>>, vector<128x128xbf16>
    tpu.vector_store %arg5[%c0_12, %c0_13], %18 {strides = array<i32>} : memref<128x128xbf16, #tpu.memory_space<vmem>>, vector<128x128xbf16>,
    return
  }
  func.func @transform_0(%arg0: i32) -> (i32, i32) {
    %c0_i32 = arith.constant 0 : i32
    %c0_i32_0 = arith.constant 0 : i32
    return %arg0, %c0_i32 : i32, i32
  }
  func.func @transform_1(%arg0: i32) -> (i32, i32) {
    %c0_i32 = arith.constant 0 : i32
    %c0_i32_0 = arith.constant 0 : i32
    %c0_i32_1 = arith.constant 0 : i32
    return %c0_i32, %c0_i32_0 : i32, i32
  }
  func.func @transform_2(%arg0: i32) -> (i32, i32) {
    %c0_i32 = arith.constant 0 : i32
    %c0_i32_0 = arith.constant 0 : i32
    %c0_i32_1 = arith.constant 0 : i32
    return %c0_i32, %c0_i32_0 : i32, i32
  }
  func.func @transform_3(%arg0: i32) -> (i32, i32) {
    %c0_i32 = arith.constant 0 : i32
    %c0_i32_0 = arith.constant 0 : i32
    %c0_i32_1 = arith.constant 0 : i32
    return %c0_i32, %c0_i32_0 : i32, i32
  }
  func.func @transform_4(%arg0: i32) -> (i32, i32) {
    %c0_i32 = arith.constant 0 : i32
    %c0_i32_0 = arith.constant 0 : i32
    return %arg0, %c0_i32 : i32, i32
  }
}

</mosaic_0001>

<bundles_post_ra>
// kernel: tpu_custom_call.1
= control target key start
LH: loop header
LB: loop body
LE: loop exit
PB: predicated region body
PF: predicated region fallthrough
CT: control target
= control target key end

     0   :  { %9 = vsyncpa [#allocation3], 0  ;;  %s1050_s0 = inlined_call_operand.hbm [shape: bf16[128,128], index: 0, kind: input, shape index: {}]   ;;  %s1051_s1 = inlined_call_operand.hbm [shape: bf16[128,128], index: 1, kind: input, shape index: {}]   ;;  %s1052_s2 = inlined_call_operand.hbm [shape: bf16[128,128], index: 2, kind: input, shape index: {}]   ;;  %s1053_s3 = inlined_call_operand.vmem [shape: f32[1,128], index: 3, kind: input, shape index: {}]   ;;  %s1054_s4 = inlined_call_operand.hbm [shape: bf16[128,128], index: 4, kind: output, shape index: {}]  }
   0x1   :  { %10 = vsyncpa [#allocation6], 0 }
   0x2   :  { %11 = vsyncpa [#allocation4], 0  ;;  %s29_s17 = sshll.u32 %s1051_s1, 4  ;;  %s966_s18 = smov [#allocation5]   ;;  %s30_s17 = int_to_ptr.hbm [resolvable:$true] %s29_s17 }
   0x3   :  { %s31_s19 = sshll.u32 %s966_s18, 4  ;;  %s16_s22 = sshll.u32 %s1050_s0, 4  ;;  %s32_s19 = int_to_ptr.vmem [resolvable:$true] %s31_s19  ;;  %s17_s22 = int_to_ptr.hbm [resolvable:$true] %s16_s22 }
   0x4   :  { %s967_s23 = smov 64   ;;  %s968_s24 = smov 4  }
   0x5   :  { %37 = dma.hbm_to_vmem [thread:$0]  %s30_s17, 1024, %s32_s19, [#allocation6], %s967_s23, %s967_s23, %s968_s24  }
   0x6   :  { %s969_s25 = smov [#allocation2]   ;;  %s42_s1 = sshll.u32 %s1052_s2, 4  ;;  %s43_s1 = int_to_ptr.hbm [resolvable:$true] %s42_s1 }
   0x7   :  { %s18_s26 = sshll.u32 %s969_s25, 4  ;;  %s970_s0 = smov [#allocation7]   ;;  %s19_s26 = int_to_ptr.vmem [resolvable:$true] %s18_s26 }
   0x8   :  { %24 = dma.hbm_to_vmem [thread:$0]  %s17_s22, 1024, %s19_s26, [#allocation3], %s967_s23, %s967_s23, %s968_s24  }
   0x9   :  { %s44_s29 = sshll.u32 %s970_s0, 4  ;;  %s45_s29 = int_to_ptr.vmem [resolvable:$true] %s44_s29 }
   0xa   :  { %50 = dma.hbm_to_vmem [thread:$0]  %s43_s1, 1024, %s45_s29, [#allocation6], %s967_s23, %s967_s23, %s968_s24  }
   0xb   :  { %960 = dma.done.wait [#allocation3], 1024  }
   0xc   :  { %961 = vsyncadd [#allocation3], 4294966272 }
   0xd   :  { %962 = dma.done.wait [#allocation6], 2048  }
   0xe   :  { %963 = vsyncadd [#allocation6], 4294965248  ;;  %v971_v0 = vmov 1065369472   ;;  %v740_v1 = vld [vmem:[#allocation5 + $0x38] sm:$0xff]  ;;  %v739_v2 = vld [vmem:[#allocation5 + $0x30] sm:$0xff] }
   0xf   :  { %163 = vmatpush.bf16.msra.mxu0 %v971_v0  ;;  %796 = vmatpush.bf16.msra.mxu3 %v971_v0  ;;  %v738_v3 = vld [vmem:[#allocation5 + $0x28] sm:$0xff]  ;;  %v737_v4 = vld [vmem:[#allocation5 + $0x20] sm:$0xff]  ;;  %v736_v5 = vld [vmem:[#allocation5 + $0x18] sm:$0xff]  ;;  %v972_v25 = vmov 0   ;;  %s615_s8 = sshll.u32 %s1054_s4, 4  ;;  %s616_s8 = int_to_ptr.hbm [resolvable:$true] %s615_s8 }
  0x10   :  { %292 = vmatpush.bf16.msra.mxu1 %v740_v1  ;;  %v735_v6 = vld [vmem:[#allocation5 + $0x10] sm:$0xff]  ;;  %v725_v7 = vld [vmem:[#allocation2] sm:$0xff]  ;;  %v734_v9 = vld [vmem:[#allocation5 + $0x8] sm:$0xff]  ;;  %828 = vset.pattern.permute.xlu0 %v972_v25 }
  0x11   :  { %v731_v8 = vld [vmem:[#allocation2 + $0x30] sm:$0xff]  ;;  %v733_v10 = vld [vmem:[#allocation5] sm:$0xff]  ;;  %v726_v11 = vld [vmem:[#allocation2 + $0x8] sm:$0xff]  ;;  %829 = vset.pattern.permute.xlu1 %v972_v25  ;;  %830 = vset.pattern.permute.xlu2 %v972_v25 }
  0x12   :  { %v732_v12 = vld [vmem:[#allocation2 + $0x38] sm:$0xff]  ;;  %v727_v13 = vld [vmem:[#allocation2 + $0x10] sm:$0xff]  ;;  %v729_v17 = vld [vmem:[#allocation2 + $0x20] sm:$0xff] }
  0x13   :  { %164 = vmatpush.bf16.msra.mxu0 %v971_v0  ;;  %797 = vmatpush.bf16.msra.mxu3 %v971_v0  ;;  %v728_v14 = vld [vmem:[#allocation2 + $0x18] sm:$0xff]  ;;  %v747_v16 = vld [vmem:[#allocation7 + $0x30] sm:$0xff]  ;;  %v746_v18 = vld [vmem:[#allocation7 + $0x28] sm:$0xff] }
  0x14   :  { %293 = vmatpush.bf16.msra.mxu1 %v739_v2  ;;  %v748_v15 = vld [vmem:[#allocation7 + $0x38] sm:$0xff]  ;;  %v730_v19 = vld [vmem:[#allocation2 + $0x28] sm:$0xff]  ;;  %v745_v20 = vld [vmem:[#allocation7 + $0x20] sm:$0xff] }
  0x15   :  { %397 = vmatpush.bf16.msra.mxu2 %v748_v15  ;;  %v744_v21 = vld [vmem:[#allocation7 + $0x18] sm:$0xff]  ;;  %v743_v22 = vld [vmem:[#allocation7 + $0x10] sm:$0xff]  ;;  %v742_v23 = vld [vmem:[#allocation7 + $0x8] sm:$0xff] }
  0x16   :  { %v741_v24 = vld [vmem:[#allocation7] sm:$0xff] }
  0x17   :  { %165 = vmatpush.bf16.msra.mxu0 %v971_v0  ;;  %798 = vmatpush.bf16.msra.mxu3 %v971_v0 }
  0x18   :  { %294 = vmatpush.bf16.msra.mxu1 %v738_v3 }
  0x19   :  { %398 = vmatpush.bf16.msra.mxu2 %v747_v16 }
  0x1b   :  { %166 = vmatpush.bf16.msra.mxu0 %v971_v0  ;;  %799 = vmatpush.bf16.msra.mxu3 %v971_v0 }
  0x1c   :  { %295 = vmatpush.bf16.msra.mxu1 %v737_v4 }
  0x1d   :  { %399 = vmatpush.bf16.msra.mxu2 %v746_v18 }
  0x1f   :  { %167 = vmatpush.bf16.msra.mxu0 %v971_v0  ;;  %800 = vmatpush.bf16.msra.mxu3 %v971_v0 }
  0x20   :  { %296 = vmatpush.bf16.msra.mxu1 %v736_v5 }
  0x21   :  { %400 = vmatpush.bf16.msra.mxu2 %v745_v20 }
  0x23   :  { %168 = vmatpush.bf16.msra.mxu0 %v971_v0  ;;  %801 = vmatpush.bf16.msra.mxu3 %v971_v0 }
  0x24   :  { %297 = vmatpush.bf16.msra.mxu1 %v735_v6 }
  0x25   :  { %401 = vmatpush.bf16.msra.mxu2 %v744_v21 }
  0x27   :  { %169 = vmatpush.bf16.msra.mxu0 %v971_v0  ;;  %802 = vmatpush.bf16.msra.mxu3 %v971_v0 }
  0x28   :  { %298 = vmatpush.bf16.msra.mxu1 %v734_v9 }
  0x29   :  { %402 = vmatpush.bf16.msra.mxu2 %v743_v22 }
  0x2b   :  { %170 = vmatpush.bf16.msra.mxu0 %v971_v0  ;;  %803 = vmatpush.bf16.msra.mxu3 %v971_v0 }
  0x2c   :  { %299 = vmatpush.bf16.msra.mxu1 %v733_v10 }
  0x2d   :  { %403 = vmatpush.bf16.msra.mxu2 %v742_v23 }
  0x2e   :  { %171 = vmatmul.bf16.vlgmr.msra.gmra.mxu0 %v725_v7  ;;  %201 = vmatmul.bf16.vlgmr.msra.gmra.mxu3 %v731_v8 }
  0x2f   :  { %804 = vmatpush.bf16.msrb.mxu3 %v740_v1  ;;  %300 = vmatmul.bf16.vlgmr.msra.gmra.mxu1 %v725_v7 }
  0x31   :  { %404 = vmatpush.bf16.msra.mxu2 %v741_v24 }
  0x33   :  { %805 = vmatpush.bf16.msrb.mxu3 %v739_v2 }
  0x37   :  { %806 = vmatpush.bf16.msrb.mxu3 %v738_v3 }
  0x3b   :  { %807 = vmatpush.bf16.msrb.mxu3 %v737_v4 }
  0x3e   :  { %176 = vmatmul.bf16.gmra.mxu0 %v726_v11  ;;  %206 = vmatmul.bf16.gmra.mxu3 %v732_v12 }
  0x3f   :  { %808 = vmatpush.bf16.msrb.mxu3 %v736_v5  ;;  %305 = vmatmul.bf16.gmra.mxu1 %v726_v11 }
  0x43   :  { %809 = vmatpush.bf16.msrb.mxu3 %v735_v6 }
  0x47   :  { %810 = vmatpush.bf16.msrb.mxu3 %v734_v9 }
  0x4b   :  { %811 = vmatpush.bf16.msrb.mxu3 %v733_v10 }
  0x4e   :  { %181 = vmatmul.bf16.gmra.mxu0 %v727_v13  ;;  %330 = vmatmul.bf16.vlgmr.msrb.gmra.mxu3 %v731_v8 }
  0x4f   :  { %310 = vmatmul.bf16.gmra.mxu1 %v727_v13  ;;  %812 = vmatpush.bf16.msra.mxu3 %v748_v15 }
  0x53   :  { %813 = vmatpush.bf16.msra.mxu3 %v747_v16 }
  0x57   :  { %814 = vmatpush.bf16.msra.mxu3 %v746_v18 }
  0x5b   :  { %815 = vmatpush.bf16.msra.mxu3 %v745_v20 }
  0x5e   :  { %186 = vmatmul.bf16.gmra.mxu0 %v728_v14  ;;  %335 = vmatmul.bf16.gmra.mxu3 %v732_v12 }
  0x5f   :  { %315 = vmatmul.bf16.gmra.mxu1 %v728_v14  ;;  %816 = vmatpush.bf16.msra.mxu3 %v744_v21 }
  0x63   :  { %817 = vmatpush.bf16.msra.mxu3 %v743_v22 }
  0x67   :  { %818 = vmatpush.bf16.msra.mxu3 %v742_v23 }
  0x6b   :  { %819 = vmatpush.bf16.msra.mxu3 %v741_v24 }
  0x6e   :  { %191 = vmatmul.bf16.gmra.mxu0 %v729_v17 }
  0x6f   :  { %320 = vmatmul.bf16.gmra.mxu1 %v729_v17 }
  0x7e   :  { %196 = vmatmul.bf16.gmra.mxu0 %v730_v19 }
  0x7f   :  { %325 = vmatmul.bf16.gmra.mxu1 %v730_v19 }
  0xab   :  { %v172_v26 = vpop.f32.mrf.mxu0 }
  0xac   :  { %v212_v27 = vmax.f32 %v172_v26, 1.0  ;;  %v301_v32 = vpop.f32.mrf.mxu1 }
  0xae   :  { %832 = vrcp.f32 %v212_v27 }
  0xb1   :  { %v202_v28 = vpop.f32.mrf.mxu3 }
  0xb2   :  { %v224_v29 = vmax.f32 %v202_v28, 1.0 }
  0xb3   :  { %v174_v30 = vpop.f32.mrf.mxu0 }
  0xb4   :  { %v833_v31 = vpop.eup %832  ;;  %834 = vrcp.f32 %v224_v29  ;;  %v213_v33 = vmax.f32 %v174_v30, 1.0  ;;  %v303_v38 = vpop.f32.mrf.mxu1 }
  0xb5   :  { %448 = vperm.xlu0 %828, %v833_v31   ;;  %v341_v39 = vpack.c.bf16 %v303_v38, %v301_v32  ;;  %v1026_v38 = vld [vmem:[%s1053_s3] ss:$0 sm:$0xff]  ;;  %s973_s3 = smov [#allocation8]  }
  0xb6   :  { %836 = vrcp.f32 %v213_v33  ;;  %s613_s5 = sshll.u32 %s973_s3, 4  ;;  %s614_s5 = int_to_ptr.vmem [resolvable:$true] %s613_s5 }
  0xb7   :  { %405 = vmatmul.bf16.vlgmr.msra.gmra.mxu2 %v341_v39 }
  0xb9   :  { %v1017_v34 = vpop.f32.mrf.mxu3 }
  0xba   :  { %v835_v35 = vpop.eup %834  ;;  %v225_v22 = vmax.f32 %v1017_v34, 1.0 }
  0xbb   :  { %v177_v36 = vpop.f32.mrf.mxu0 }
  0xbc   :  { %v214_v37 = vmax.f32 %v177_v36, 1.0  ;;  %v837_v41 = vpop.eup %836  ;;  %v306_v45 = vpop.f32.mrf.mxu1 }
  0xbd   :  { %508 = vperm.xlu0 %828, %v835_v35  }
  0xbe   :  { %838 = vrcp.f32 %v214_v37 }
  0xc1   :  { %v1019_v40 = vpop.f32.mrf.mxu3 }
  0xc2   :  { %v226_v28 = vmax.f32 %v1019_v40, 1.0 }
  0xc3   :  { %v179_v42 = vpop.f32.mrf.mxu0 }
  0xc4   :  { %v839_v43 = vpop.eup %838  ;;  %v215_v44 = vmax.f32 %v179_v42, 1.0  ;;  %v308_v50 = vpop.f32.mrf.mxu1 }
  0xc5   :  { %453 = vperm.xlu0 %828, %v837_v41   ;;  %458 = vperm.xlu1 %829, %v839_v43   ;;  %v342_v51 = vpack.c.bf16 %v308_v50, %v306_v45 }
  0xc6   :  { %840 = vrcp.f32 %v215_v44 }
  0xc7   :  { %410 = vmatmul.bf16.gmra.mxu2 %v342_v51 }
  0xc9   :  { %v209_v46 = vpop.f32.mrf.mxu3 }
  0xca   :  { %v227_v16 = vmax.f32 %v209_v46, 1.0 }
  0xcb   :  { %v182_v47 = vpop.f32.mrf.mxu0 }
  0xcc   :  { %v841_v48 = vpop.eup %840  ;;  %v216_v49 = vmax.f32 %v182_v47, 1.0  ;;  %v311_v56 = vpop.f32.mrf.mxu1 }
  0xcd   :  { %463 = vperm.xlu1 %829, %v841_v48  }
  0xce   :  { %842 = vrcp.f32 %v216_v49 }
  0xd1   :  { %v331_v52 = vpop.f32.mrf.mxu3 }
  0xd3   :  { %v184_v53 = vpop.f32.mrf.mxu0 }
  0xd4   :  { %v843_v54 = vpop.eup %842  ;;  %v217_v55 = vmax.f32 %v184_v53, 1.0  ;;  %v313_v62 = vpop.f32.mrf.mxu1 }
  0xd5   :  { %468 = vperm.xlu2 %830, %v843_v54   ;;  %v343_v63 = vpack.c.bf16 %v313_v62, %v311_v56 }
  0xd6   :  { %844 = vrcp.f32 %v217_v55 }
  0xd7   :  { %415 = vmatmul.bf16.gmra.mxu2 %v343_v63 }
  0xd9   :  { %v333_v57 = vpop.f32.mrf.mxu3 }
  0xda   :  { %v347_v58 = vpack.c.bf16 %v333_v57, %v331_v52 }
  0xdb   :  { %v187_v59 = vpop.f32.mrf.mxu0 }
  0xdc   :  { %v845_v60 = vpop.eup %844  ;;  %v218_v61 = vmax.f32 %v187_v59, 1.0  ;;  %435 = vmatmul.bf16.vlgmr.msra.gmra.mxu3 %v347_v58  ;;  %v316_v4 = vpop.f32.mrf.mxu1 }
  0xdd   :  { %473 = vperm.xlu2 %830, %v845_v60  }
  0xde   :  { %846 = vrcp.f32 %v218_v61 }
  0xe1   :  { %v336_v0 = vpop.f32.mrf.mxu3 }
  0xe3   :  { %v189_v1 = vpop.f32.mrf.mxu0 }
  0xe4   :  { %v847_v2 = vpop.eup %846  ;;  %v219_v3 = vmax.f32 %v189_v1, 1.0  ;;  %v318_v10 = vpop.f32.mrf.mxu1 }
  0xe5   :  { %478 = vperm.xlu0 %828, %v847_v2   ;;  %v344_v11 = vpack.c.bf16 %v318_v10, %v316_v4 }
  0xe6   :  { %848 = vrcp.f32 %v219_v3 }
  0xe7   :  { %420 = vmatmul.bf16.gmra.mxu2 %v344_v11 }
  0xe9   :  { %v338_v5 = vpop.f32.mrf.mxu3 }
  0xea   :  { %v348_v6 = vpack.c.bf16 %v338_v5, %v336_v0 }
  0xeb   :  { %v192_v7 = vpop.f32.mrf.mxu0 }
  0xec   :  { %v849_v8 = vpop.eup %848  ;;  %v220_v9 = vmax.f32 %v192_v7, 1.0  ;;  %440 = vmatmul.bf16.gmra.mxu3 %v348_v6  ;;  %v321_v15 = vpop.f32.mrf.mxu1 }
  0xed   :  { %483 = vperm.xlu1 %829, %v849_v8  }
  0xee   :  { %850 = vrcp.f32 %v220_v9 }
  0xf3   :  { %v194_v12 = vpop.f32.mrf.mxu0 }
  0xf4   :  { %v851_v13 = vpop.eup %850  ;;  %v221_v14 = vmax.f32 %v194_v12, 1.0  ;;  %v323_v20 = vpop.f32.mrf.mxu1 }
  0xf5   :  { %488 = vperm.xlu2 %830, %v851_v13   ;;  %v345_v21 = vpack.c.bf16 %v323_v20, %v321_v15 }
  0xf6   :  { %852 = vrcp.f32 %v221_v14 }
  0xf7   :  { %854 = vrcp.f32 %v227_v16  ;;  %425 = vmatmul.bf16.gmra.mxu2 %v345_v21 }
  0xfb   :  { %v197_v17 = vpop.f32.mrf.mxu0 }
  0xfc   :  { %v853_v18 = vpop.eup %852  ;;  %v222_v19 = vmax.f32 %v197_v17, 1.0  ;;  %v326_v27 = vpop.f32.mrf.mxu1 }
  0xfd   :  { %493 = vperm.xlu0 %828, %v853_v18   ;;  %v855_v23 = vpop.eup %854 }
  0xfe   :  { %856 = vrcp.f32 %v222_v19 }
  0xff   :  { %858 = vrcp.f32 %v225_v22 }
 0x103   :  { %v199_v24 = vpop.f32.mrf.mxu0 }
 0x104   :  { %v857_v25 = vpop.eup %856  ;;  %v223_v26 = vmax.f32 %v199_v24, 1.0  ;;  %v328_v31 = vpop.f32.mrf.mxu1 }
 0x105   :  { %523 = vperm.xlu0 %828, %v855_v23   ;;  %498 = vperm.xlu1 %829, %v857_v25   ;;  %v859_v29 = vpop.eup %858  ;;  %v346_v32 = vpack.c.bf16 %v328_v31, %v326_v27 }
 0x106   :  { %860 = vrcp.f32 %v223_v26 }
 0x107   :  { %862 = vrcp.f32 %v226_v28  ;;  %430 = vmatmul.bf16.gmra.mxu2 %v346_v32 }
 0x10c   :  { %v861_v30 = vpop.eup %860 }
 0x10d   :  { %513 = vperm.xlu1 %829, %v859_v29   ;;  %503 = vperm.xlu2 %830, %v861_v30   ;;  %v863_v33 = vpop.eup %862 }
 0x115   :  { %518 = vperm.xlu2 %830, %v863_v33  }
 0x127   :  { %v449_v34 = vpop.permute.xlu0 %448 }
 0x12f   :  { %v509_v35 = vpop.permute.xlu0 %508  ;;  %v469_v42 = vpop.permute.xlu2 %468 }
 0x137   :  { %v454_v39 = vpop.permute.xlu0 %453  ;;  %v459_v47 = vpop.permute.xlu1 %458 }
 0x138   :  { %v474_v50 = vpop.permute.xlu2 %473 }
 0x13a   :  { %v406_v36 = vpop.f32.mrf.mxu2 }
 0x13b   :  { %v526_v37 = vmul.f32 %v449_v34, %v406_v36 }
 0x13d   :  { %v545_v41 = vadd.f32 %v1026_v38, %v526_v37 }
 0x13f   :  { %v561_v45 = vmax.f32 %v545_v41, 0.0  ;;  %v464_v52 = vpop.permute.xlu1 %463 }
 0x142   :  { %v408_v40 = vpop.f32.mrf.mxu2 }
 0x143   :  { %v527_v43 = vmul.f32 %v454_v39, %v408_v40 }
 0x145   :  { %v546_v44 = vadd.f32 %v1026_v38, %v527_v43 }
 0x147   :  { %v562_v46 = vmax.f32 %v546_v44, 0.0 }
 0x149   :  { %v752_v48 = vpack.c.bf16 %v562_v46, %v561_v45 }
 0x14a   :  { %v411_v49 = vpop.f32.mrf.mxu2 }
 0x14b   :  { %753 = vst [vmem:[#allocation8] sm:$0xff] %v752_v48   ;;  %v528_v51 = vmul.f32 %v459_v47, %v411_v49 }
 0x14d   :  { %v547_v54 = vadd.f32 %v1026_v38, %v528_v51 }
 0x14f   :  { %v489_v57 = vpop.permute.xlu2 %488  ;;  %v563_v58 = vmax.f32 %v547_v54, 0.0 }
 0x152   :  { %v413_v53 = vpop.f32.mrf.mxu2 }
 0x153   :  { %v529_v55 = vmul.f32 %v464_v52, %v413_v53 }
 0x155   :  { %v548_v56 = vadd.f32 %v1026_v38, %v529_v55 }
 0x157   :  { %v564_v59 = vmax.f32 %v548_v56, 0.0  ;;  %v479_v63 = vpop.permute.xlu0 %478 }
 0x159   :  { %v757_v61 = vpack.c.bf16 %v564_v59, %v563_v58 }
 0x15a   :  { %v416_v62 = vpop.f32.mrf.mxu2 }
 0x15b   :  { %789 = vst [vmem:[#allocation8 + $0x8] sm:$0xff] %v757_v61   ;;  %v530_v0 = vmul.f32 %v469_v42, %v416_v62 }
 0x15d   :  { %v549_v4 = vadd.f32 %v1026_v38, %v530_v0 }
 0x15f   :  { %v436_v60 = vpop.f32.mrf.mxu3  ;;  %v484_v7 = vpop.permute.xlu1 %483  ;;  %v565_v8 = vmax.f32 %v549_v4, 0.0 }
 0x160   :  { %v538_v28 = vmul.f32 %v509_v35, %v436_v60 }
 0x162   :  { %v418_v3 = vpop.f32.mrf.mxu2  ;;  %v557_v34 = vadd.f32 %v1026_v38, %v538_v28 }
 0x163   :  { %v531_v5 = vmul.f32 %v474_v50, %v418_v3 }
 0x164   :  { %v573_v41 = vmax.f32 %v557_v34, 0.0 }
 0x165   :  { %v550_v6 = vadd.f32 %v1026_v38, %v531_v5 }
 0x167   :  { %v438_v1 = vpop.f32.mrf.mxu3  ;;  %v504_v2 = vpop.permute.xlu2 %503  ;;  %v566_v9 = vmax.f32 %v550_v6, 0.0 }
 0x169   :  { %v762_v12 = vpack.c.bf16 %v566_v9, %v565_v8 }
 0x16a   :  { %v421_v14 = vpop.f32.mrf.mxu2 }
 0x16b   :  { %790 = vst [vmem:[#allocation8 + $0x10] sm:$0xff] %v762_v12   ;;  %v532_v16 = vmul.f32 %v479_v63, %v421_v14 }
 0x16d   :  { %v551_v24 = vadd.f32 %v1026_v38, %v532_v16 }
 0x16f   :  { %v441_v10 = vpop.f32.mrf.mxu3  ;;  %v494_v11 = vpop.permute.xlu0 %493  ;;  %v567_v31 = vmax.f32 %v551_v24, 0.0 }
 0x170   :  { %v519_v13 = vpop.permute.xlu2 %518 }
 0x171   :  { %v540_v15 = vmul.f32 %v519_v13, %v441_v10 }
 0x172   :  { %v423_v23 = vpop.f32.mrf.mxu2 }
 0x173   :  { %v559_v19 = vadd.f32 %v1026_v38, %v540_v15  ;;  %v533_v25 = vmul.f32 %v484_v7, %v423_v23 }
 0x175   :  { %v575_v26 = vmax.f32 %v559_v19, 0.0  ;;  %v552_v29 = vadd.f32 %v1026_v38, %v533_v25 }
 0x177   :  { %v443_v17 = vpop.f32.mrf.mxu3  ;;  %v524_v18 = vpop.permute.xlu0 %523  ;;  %v568_v32 = vmax.f32 %v552_v29, 0.0 }
 0x178   :  { %v541_v20 = vmul.f32 %v524_v18, %v443_v17  ;;  %v499_v21 = vpop.permute.xlu1 %498 }
 0x179   :  { %v767_v36 = vpack.c.bf16 %v568_v32, %v567_v31 }
 0x17a   :  { %v560_v22 = vadd.f32 %v1026_v38, %v541_v20  ;;  %v426_v39 = vpop.f32.mrf.mxu2 }
 0x17b   :  { %791 = vst [vmem:[#allocation8 + $0x18] sm:$0xff] %v767_v36   ;;  %v534_v44 = vmul.f32 %v489_v57, %v426_v39 }
 0x17c   :  { %v576_v27 = vmax.f32 %v560_v22, 0.0 }
 0x17d   :  { %v553_v45 = vadd.f32 %v1026_v38, %v534_v44 }
 0x17e   :  { %v787_v30 = vpack.c.bf16 %v576_v27, %v575_v26 }
 0x17f   :  { %v569_v48 = vmax.f32 %v553_v45, 0.0 }
 0x180   :  { %795 = vst [vmem:[#allocation8 + $0x38] sm:$0xff] %v787_v30   ;;  %v514_v33 = vpop.permute.xlu1 %513 }
 0x181   :  { %v539_v37 = vmul.f32 %v514_v33, %v438_v1 }
 0x182   :  { %v428_v35 = vpop.f32.mrf.mxu2 }
 0x183   :  { %v558_v40 = vadd.f32 %v1026_v38, %v539_v37  ;;  %v535_v46 = vmul.f32 %v494_v11, %v428_v35 }
 0x185   :  { %v574_v42 = vmax.f32 %v558_v40, 0.0  ;;  %v554_v47 = vadd.f32 %v1026_v38, %v535_v46 }
 0x187   :  { %v782_v43 = vpack.c.bf16 %v574_v42, %v573_v41  ;;  %v570_v49 = vmax.f32 %v554_v47, 0.0 }
 0x189   :  { %794 = vst [vmem:[#allocation8 + $0x30] sm:$0xff] %v782_v43   ;;  %v772_v50 = vpack.c.bf16 %v570_v49, %v569_v48 }
 0x18a   :  { %v431_v51 = vpop.f32.mrf.mxu2 }
 0x18b   :  { %792 = vst [vmem:[#allocation8 + $0x20] sm:$0xff] %v772_v50   ;;  %v536_v52 = vmul.f32 %v499_v21, %v431_v51 }
 0x18d   :  { %v555_v54 = vadd.f32 %v1026_v38, %v536_v52 }
 0x18f   :  { %v571_v57 = vmax.f32 %v555_v54, 0.0 }
 0x192   :  { %v433_v53 = vpop.f32.mrf.mxu2 }
 0x193   :  { %v537_v55 = vmul.f32 %v504_v2, %v433_v53 }
 0x195   :  { %v556_v56 = vadd.f32 %v1026_v38, %v537_v55 }
 0x197   :  { %v572_v58 = vmax.f32 %v556_v56, 0.0 }
 0x199   :  { %v777_v59 = vpack.c.bf16 %v572_v58, %v571_v57 }
 0x19b   :  { %793 = vst [vmem:[#allocation8 + $0x28] sm:$0xff] %v777_v59  }
 0x19c   :  { %621 = dma.vmem_to_hbm [thread:$0]  %s614_s5, 1024, %s616_s8, [#allocation4], %s967_s23, %s967_s23, %s968_s24  }
 0x19d   :  { %964 = dma.done.wait [#allocation4], 1024  }
 0x19e   :  { %965 = vsyncadd [#allocation4], 4294966272 }
 0x19f   :  { %626 = vsyncpa [#allocation3], 1 }
 0x1a0   :  { %627 = vsyncpa [#allocation6], 1 }
 0x1a1   :  { %628 = vsyncpa [#allocation4], 1 }

</bundles_post_ra>
